<compile_context>
chip_gen: v7x
topology: tpu7x:2x2x1
jax: 0.10.0
libtpu: 0.0.40
codegen_flags: <defaults>
</compile_context>

<pallas_src>
import functools

import jax
import jax.numpy as jnp
import numpy as np
from jax.experimental import pallas as pl
from jax.experimental.pallas import tpu as pltpu


def _make_kernel(num_layers: int, num_models: int, num_passes: int, use_dropout: bool):
    """Single-step kernel: all models unrolled, all weights VMEM-resident."""
    num_hidden = num_layers - 1

    def kernel(*refs):
        # refs = (x, w0, b0, ..., w_{L-1}, b_{L-1}, [mask_0, ..., mask_{H-1}], out)
        x_ref = refs[0]
        wb = refs[1:1 + 2 * num_layers]
        mask_refs = (refs[1 + 2 * num_layers:1 + 2 * num_layers + num_hidden]
                     if use_dropout else ())
        out_ref = refs[-1]

        # Hoist the input cast out of the model loop (bf16 for the MXU).
        x_bf16 = x_ref[...].astype(jnp.bfloat16)                    # (B, d_in)

        outs = []
        for m in range(num_models):                                  # static unroll
            # --- layer 0: shared input => compute once per model on (B, d_in) ---
            h = jnp.dot(x_bf16, wb[0][m],
                        preferred_element_type=jnp.float32) + wb[1][m]
            if num_layers > 1:
                h = jnp.maximum(h, 0.0)                              # ReLU (f32 VPU)
                if use_dropout:
                    # Replicate to num_passes row-blocks, then per-pass {0,1} mask.
                    # (1/(1-p) scale is pre-folded into the next layer's weights.)
                    h = jnp.tile(h, (num_passes, 1))                 # (num_passes*B, d0)
                    h = h * mask_refs[0][m].astype(jnp.float32)

            # --- remaining layers ---
            for li in range(1, num_layers):
                h = jnp.dot(h.astype(jnp.bfloat16), wb[2 * li][m],
                            preferred_element_type=jnp.float32) + wb[2 * li + 1][m]
                if li < num_layers - 1:
                    h = jnp.maximum(h, 0.0)
                    if use_dropout:
                        h = h * mask_refs[li][m].astype(jnp.float32)
            outs.append(h)

        # Lane-fold all models into a single (denser) store: (rows, num_models*output_size).
        out_ref[...] = jnp.concatenate(outs, axis=-1).astype(out_ref.dtype)

    return kernel


@functools.partial(jax.jit, static_argnames=("num_passes", "dropout_prob"))
def uncertainty_mlp_forward(x, params, dropout_key, *, num_passes: int, dropout_prob: float):
    """
    x:           (B, input_size) float32, shared input (shared_input=True path)
    params:      list of (W, b) per layer; W: (num_models, d_in, d_out) f32,
                 b: (num_models, 1, d_out) f32 (weights pre-transposed vs. PyTorch (out, in))
    dropout_key: jax PRNG key for the MC-dropout masks (unused if dropout_prob == 0)
    returns      (num_models * num_passes, B, output_size) float32
    """
    assert 0.0 <= dropout_prob < 1.0, "dropout_prob must be in [0, 1)"
    num_layers = len(params)
    num_models = params[0][0].shape[0]
    B, _ = x.shape
    output_size = params[-1][0].shape[-1]
    use_dropout = (dropout_prob > 0.0) and (num_layers > 1)
    keep_p = 1.0 - dropout_prob
    rows = num_passes * B if use_dropout else B   # kernel-internal row count

    inputs = [x]
    for li, (w, b) in enumerate(params):
        w_eff = w
        if use_dropout and li >= 1:
            # Fold the dropout 1/(1-p) scale into the weight that consumes the masked
            # activation (done in f32, before the bf16 cast) -> masks stay exact {0,1}.
            w_eff = w * jnp.float32(1.0 / keep_p)
        inputs.append(w_eff.astype(jnp.bfloat16))   # MXU-native bf16 weights
        inputs.append(b)                            # bias stays f32 (elementwise stays f32)

    if use_dropout:
        keys = jax.random.split(dropout_key, num_layers - 1)
        for li in range(num_layers - 1):
            d_out = params[li][0].shape[-1]
            keep = jax.random.bernoulli(keys[li], keep_p, (num_models, rows, d_out))
            inputs.append(keep.astype(jnp.bfloat16))  # {0,1} bf16: half the bytes of f32 masks

    vmem_spec = pl.BlockSpec(memory_space=pltpu.MemorySpace.VMEM)
    out = pl.pallas_call(
        _make_kernel(num_layers, num_models, num_passes, use_dropout),
        out_shape=jax.ShapeDtypeStruct((rows, num_models * output_size), jnp.float32),
        in_specs=[vmem_spec] * len(inputs),
        out_specs=vmem_spec,
    )(*inputs)

    # (rows, M*out) -> (M, rows, out)
    out = out.reshape(rows, num_models, output_size).transpose(1, 0, 2)
    if use_dropout:
        out = out.reshape(num_models, num_passes, B, output_size)
    else:
        # Without dropout every pass is identical: replicate instead of recomputing.
        out = jnp.broadcast_to(out[:, None], (num_models, num_passes, B, output_size))
    # Matches PyTorch ordering output[m * num_passes + j].
    return out.reshape(num_models * num_passes, B, output_size)


def init_params(key, input_size, hidden_sizes, output_size, num_models):
    """'rl' initialization: orthogonal weights (gain=sqrt(2)), zero biases.

    Weights are stored as (num_models, d_in, d_out) — PyTorch's (out, in) transposed — so the
    kernel can do x @ W directly.
    """
    sizes = [input_size] + list(hidden_sizes) + [output_size]
    ortho = jax.nn.initializers.orthogonal(scale=float(np.sqrt(2.0)))
    params = []
    for li in range(len(sizes) - 1):
        d_in, d_out = sizes[li], sizes[li + 1]
        ws = []
        for _ in range(num_models):
            key, sub = jax.random.split(key)
            w_pt = ortho(sub, (d_out, d_in), jnp.float32)   # PyTorch layout (out, in)
            ws.append(w_pt.T)                                # -> (in, out)
        w = jnp.stack(ws, axis=0)                            # (M, d_in, d_out)
        b = jnp.zeros((num_models, 1, d_out), jnp.float32)   # (M, 1, d_out)
        params.append((w, b))
    return params


def reference_forward(x, params, num_passes):
    """Pure-JAX f32 reference (dropout disabled), mirrors the PyTorch nested loops."""
    num_models = params[0][0].shape[0]
    outs = []
    for m in range(num_models):
        for _ in range(num_passes):
            h = x
            for li, (w, b) in enumerate(params):
                h = jnp.dot(h, w[m], precision=jax.lax.Precision.HIGHEST) + b[m]
                if li < len(params) - 1:
                    h = jnp.maximum(h, 0.0)
            outs.append(h)
    return jnp.stack(outs, axis=0)


if __name__ == "__main__":
    # Small, module-consistent shapes.
    # (Deployment note: prefer hidden dims as multiples of 128 and output_size folded/padded
    #  to a multiple of 128 for lane-dense vregs/stores on real workloads.)
    input_size = 16
    hidden_sizes = [32, 32]
    output_size = 8
    num_passes = 2
    num_models = 3
    batch = 8

    key = jax.random.PRNGKey(0)
    key, pkey, xkey, dkey = jax.random.split(key, 4)

    params = init_params(pkey, input_size, hidden_sizes, output_size, num_models)
    x = jax.random.normal(xkey, (batch, input_size), jnp.float32)

    # 1) Correctness check with dropout disabled (deterministic path) vs. f32 reference.
    out_nodrop = uncertainty_mlp_forward(
        x, params, dkey, num_passes=num_passes, dropout_prob=0.0)
    out_nodrop = jax.block_until_ready(out_nodrop)
    ref = reference_forward(x, params, num_passes)
    assert out_nodrop.shape == (num_models * num_passes, batch, output_size)
    # bf16 matmul inputs (f32 accumulation) vs. f32 reference -> small relative error budget.
    np.testing.assert_allclose(np.asarray(out_nodrop), np.asarray(ref),
                               rtol=2e-2, atol=2e-2)

    # 2) MC-dropout forward (dropout active at inference, independent mask per pass).
    out = uncertainty_mlp_forward(
        x, params, dkey, num_passes=num_passes, dropout_prob=0.1)
    out = jax.block_until_ready(out)
    assert out.shape == (num_models * num_passes, batch, output_size)
    assert bool(jnp.all(jnp.isfinite(out)))
    # Different passes of the same model must see different dropout masks.
    assert not np.allclose(np.asarray(out[0]), np.asarray(out[1]))

    print("KERNEL_OK")
</pallas_src>

<mosaic_0001>
module attributes {stable_mosaic.version = 11 : i64} {
  func.func @kernel(%arg0: memref<8x16xf32, #tpu.memory_space<vmem>>, %arg1: memref<3x16x32xbf16, #tpu.memory_space<vmem>>, %arg2: memref<3x1x32xf32, #tpu.memory_space<vmem>>, %arg3: memref<3x32x32xbf16, #tpu.memory_space<vmem>>, %arg4: memref<3x1x32xf32, #tpu.memory_space<vmem>>, %arg5: memref<3x32x8xbf16, #tpu.memory_space<vmem>>, %arg6: memref<3x1x8xf32, #tpu.memory_space<vmem>>, %arg7: memref<8x24xf32, #tpu.memory_space<vmem>>) attributes {dimension_semantics = [], scalar_prefetch = 0 : i64, scratch_operands = 0 : i64, tpu.core_type = #tpu.core_type<tc>} {
    %c0 = arith.constant 0 : index
    %c0_0 = arith.constant 0 : index
    %0 = vector.load %arg0[%c0, %c0_0] : memref<8x16xf32, #tpu.memory_space<vmem>>, vector<8x16xf32>
    %1 = arith.truncf %0 : vector<8x16xf32> to vector<8x16xbf16>
    %c0_1 = arith.constant 0 : index
    %c0_2 = arith.constant 0 : index
    %c0_3 = arith.constant 0 : index
    %2 = vector.load %arg1[%c0_1, %c0_2, %c0_3] : memref<3x16x32xbf16, #tpu.memory_space<vmem>>, vector<1x16x32xbf16>
    %3 = vector.shape_cast %2 : vector<1x16x32xbf16> to vector<16x32xbf16>
    %cst = arith.constant dense<0.000000e+00> : vector<8x32xf32>
    %4 = tpu.matmul %1, %3, %cst {dimension_numbers = #tpu.dot_dimension_numbers<[1], [0], [0], [1], [0, 0, 1, 1], [], []>} : vector<8x16xbf16>, vector<16x32xbf16>, vector<8x32xf32> -> vector<8x32xf32>
    %c0_4 = arith.constant 0 : index
    %c0_5 = arith.constant 0 : index
    %c0_6 = arith.constant 0 : index
    %5 = vector.load %arg2[%c0_4, %c0_5, %c0_6] : memref<3x1x32xf32, #tpu.memory_space<vmem>>, vector<1x1x32xf32>
    %6 = vector.shape_cast %5 : vector<1x1x32xf32> to vector<1x32xf32>
    %7 = vector.broadcast %6 : vector<1x32xf32> to vector<8x32xf32>
    %8 = arith.addf %4, %7 : vector<8x32xf32>
    %cst_7 = arith.constant 0.000000e+00 : f32
    %9 = vector.broadcast %cst_7 : f32 to vector<8x32xf32>
    %10 = arith.maximumf %8, %9 : vector<8x32xf32>
    %11 = arith.truncf %10 : vector<8x32xf32> to vector<8x32xbf16>
    %c0_8 = arith.constant 0 : index
    %c0_9 = arith.constant 0 : index
    %c0_10 = arith.constant 0 : index
    %12 = vector.load %arg3[%c0_8, %c0_9, %c0_10] : memref<3x32x32xbf16, #tpu.memory_space<vmem>>, vector<1x32x32xbf16>
    %13 = vector.shape_cast %12 : vector<1x32x32xbf16> to vector<32x32xbf16>
    %cst_11 = arith.constant dense<0.000000e+00> : vector<8x32xf32>
    %14 = tpu.matmul %11, %13, %cst_11 {dimension_numbers = #tpu.dot_dimension_numbers<[1], [0], [0], [1], [0, 0, 1, 1], [], []>} : vector<8x32xbf16>, vector<32x32xbf16>, vector<8x32xf32> -> vector<8x32xf32>
    %c0_12 = arith.constant 0 : index
    %c0_13 = arith.constant 0 : index
    %c0_14 = arith.constant 0 : index
    %15 = vector.load %arg4[%c0_12, %c0_13, %c0_14] : memref<3x1x32xf32, #tpu.memory_space<vmem>>, vector<1x1x32xf32>
    %16 = vector.shape_cast %15 : vector<1x1x32xf32> to vector<1x32xf32>
    %17 = vector.broadcast %16 : vector<1x32xf32> to vector<8x32xf32>
    %18 = arith.addf %14, %17 : vector<8x32xf32>
    %cst_15 = arith.constant 0.000000e+00 : f32
    %19 = vector.broadcast %cst_15 : f32 to vector<8x32xf32>
    %20 = arith.maximumf %18, %19 : vector<8x32xf32>
    %21 = arith.truncf %20 : vector<8x32xf32> to vector<8x32xbf16>
    %c0_16 = arith.constant 0 : index
    %c0_17 = arith.constant 0 : index
    %c0_18 = arith.constant 0 : index
    %22 = vector.load %arg5[%c0_16, %c0_17, %c0_18] : memref<3x32x8xbf16, #tpu.memory_space<vmem>>, vector<1x32x8xbf16>
    %23 = vector.shape_cast %22 : vector<1x32x8xbf16> to vector<32x8xbf16>
    %cst_19 = arith.constant dense<0.000000e+00> : vector<8x8xf32>
    %24 = tpu.matmul %21, %23, %cst_19 {dimension_numbers = #tpu.dot_dimension_numbers<[1], [0], [0], [1], [0, 0, 1, 1], [], []>} : vector<8x32xbf16>, vector<32x8xbf16>, vector<8x8xf32> -> vector<8x8xf32>
    %c0_20 = arith.constant 0 : index
    %c0_21 = arith.constant 0 : index
    %c0_22 = arith.constant 0 : index
    %25 = vector.load %arg6[%c0_20, %c0_21, %c0_22] : memref<3x1x8xf32, #tpu.memory_space<vmem>>, vector<1x1x8xf32>
    %26 = vector.shape_cast %25 : vector<1x1x8xf32> to vector<1x8xf32>
    %27 = vector.broadcast %26 : vector<1x8xf32> to vector<8x8xf32>
    %28 = arith.addf %24, %27 : vector<8x8xf32>
    %c1 = arith.constant 1 : index
    %c0_23 = arith.constant 0 : index
    %c0_24 = arith.constant 0 : index
    %29 = vector.load %arg1[%c1, %c0_23, %c0_24] : memref<3x16x32xbf16, #tpu.memory_space<vmem>>, vector<1x16x32xbf16>
    %30 = vector.shape_cast %29 : vector<1x16x32xbf16> to vector<16x32xbf16>
    %cst_25 = arith.constant dense<0.000000e+00> : vector<8x32xf32>
    %31 = tpu.matmul %1, %30, %cst_25 {dimension_numbers = #tpu.dot_dimension_numbers<[1], [0], [0], [1], [0, 0, 1, 1], [], []>} : vector<8x16xbf16>, vector<16x32xbf16>, vector<8x32xf32> -> vector<8x32xf32>
    %c1_26 = arith.constant 1 : index
    %c0_27 = arith.constant 0 : index
    %c0_28 = arith.constant 0 : index
    %32 = vector.load %arg2[%c1_26, %c0_27, %c0_28] : memref<3x1x32xf32, #tpu.memory_space<vmem>>, vector<1x1x32xf32>
    %33 = vector.shape_cast %32 : vector<1x1x32xf32> to vector<1x32xf32>
    %34 = vector.broadcast %33 : vector<1x32xf32> to vector<8x32xf32>
    %35 = arith.addf %31, %34 : vector<8x32xf32>
    %cst_29 = arith.constant 0.000000e+00 : f32
    %36 = vector.broadcast %cst_29 : f32 to vector<8x32xf32>
    %37 = arith.maximumf %35, %36 : vector<8x32xf32>
    %38 = arith.truncf %37 : vector<8x32xf32> to vector<8x32xbf16>
    %c1_30 = arith.constant 1 : index
    %c0_31 = arith.constant 0 : index
    %c0_32 = arith.constant 0 : index
    %39 = vector.load %arg3[%c1_30, %c0_31, %c0_32] : memref<3x32x32xbf16, #tpu.memory_space<vmem>>, vector<1x32x32xbf16>
    %40 = vector.shape_cast %39 : vector<1x32x32xbf16> to vector<32x32xbf16>
    %cst_33 = arith.constant dense<0.000000e+00> : vector<8x32xf32>
    %41 = tpu.matmul %38, %40, %cst_33 {dimension_numbers = #tpu.dot_dimension_numbers<[1], [0], [0], [1], [0, 0, 1, 1], [], []>} : vector<8x32xbf16>, vector<32x32xbf16>, vector<8x32xf32> -> vector<8x32xf32>
    %c1_34 = arith.constant 1 : index
    %c0_35 = arith.constant 0 : index
    %c0_36 = arith.constant 0 : index
    %42 = vector.load %arg4[%c1_34, %c0_35, %c0_36] : memref<3x1x32xf32, #tpu.memory_space<vmem>>, vector<1x1x32xf32>
    %43 = vector.shape_cast %42 : vector<1x1x32xf32> to vector<1x32xf32>
    %44 = vector.broadcast %43 : vector<1x32xf32> to vector<8x32xf32>
    %45 = arith.addf %41, %44 : vector<8x32xf32>
    %cst_37 = arith.constant 0.000000e+00 : f32
    %46 = vector.broadcast %cst_37 : f32 to vector<8x32xf32>
    %47 = arith.maximumf %45, %46 : vector<8x32xf32>
    %48 = arith.truncf %47 : vector<8x32xf32> to vector<8x32xbf16>
    %c1_38 = arith.constant 1 : index
    %c0_39 = arith.constant 0 : index
    %c0_40 = arith.constant 0 : index
    %49 = vector.load %arg5[%c1_38, %c0_39, %c0_40] : memref<3x32x8xbf16, #tpu.memory_space<vmem>>, vector<1x32x8xbf16>
    %50 = vector.shape_cast %49 : vector<1x32x8xbf16> to vector<32x8xbf16>
    %cst_41 = arith.constant dense<0.000000e+00> : vector<8x8xf32>
    %51 = tpu.matmul %48, %50, %cst_41 {dimension_numbers = #tpu.dot_dimension_numbers<[1], [0], [0], [1], [0, 0, 1, 1], [], []>} : vector<8x32xbf16>, vector<32x8xbf16>, vector<8x8xf32> -> vector<8x8xf32>
    %c1_42 = arith.constant 1 : index
    %c0_43 = arith.constant 0 : index
    %c0_44 = arith.constant 0 : index
    %52 = vector.load %arg6[%c1_42, %c0_43, %c0_44] : memref<3x1x8xf32, #tpu.memory_space<vmem>>, vector<1x1x8xf32>
    %53 = vector.shape_cast %52 : vector<1x1x8xf32> to vector<1x8xf32>
    %54 = vector.broadcast %53 : vector<1x8xf32> to vector<8x8xf32>
    %55 = arith.addf %51, %54 : vector<8x8xf32>
    %c2 = arith.constant 2 : index
    %c0_45 = arith.constant 0 : index
    %c0_46 = arith.constant 0 : index
    %56 = vector.load %arg1[%c2, %c0_45, %c0_46] : memref<3x16x32xbf16, #tpu.memory_space<vmem>>, vector<1x16x32xbf16>
    %57 = vector.shape_cast %56 : vector<1x16x32xbf16> to vector<16x32xbf16>
    %cst_47 = arith.constant dense<0.000000e+00> : vector<8x32xf32>
    %58 = tpu.matmul %1, %57, %cst_47 {dimension_numbers = #tpu.dot_dimension_numbers<[1], [0], [0], [1], [0, 0, 1, 1], [], []>} : vector<8x16xbf16>, vector<16x32xbf16>, vector<8x32xf32> -> vector<8x32xf32>
    %c2_48 = arith.constant 2 : index
    %c0_49 = arith.constant 0 : index
    %c0_50 = arith.constant 0 : index
    %59 = vector.load %arg2[%c2_48, %c0_49, %c0_50] : memref<3x1x32xf32, #tpu.memory_space<vmem>>, vector<1x1x32xf32>
    %60 = vector.shape_cast %59 : vector<1x1x32xf32> to vector<1x32xf32>
    %61 = vector.broadcast %60 : vector<1x32xf32> to vector<8x32xf32>
    %62 = arith.addf %58, %61 : vector<8x32xf32>
    %cst_51 = arith.constant 0.000000e+00 : f32
    %63 = vector.broadcast %cst_51 : f32 to vector<8x32xf32>
    %64 = arith.maximumf %62, %63 : vector<8x32xf32>
    %65 = arith.truncf %64 : vector<8x32xf32> to vector<8x32xbf16>
    %c2_52 = arith.constant 2 : index
    %c0_53 = arith.constant 0 : index
    %c0_54 = arith.constant 0 : index
    %66 = vector.load %arg3[%c2_52, %c0_53, %c0_54] : memref<3x32x32xbf16, #tpu.memory_space<vmem>>, vector<1x32x32xbf16>
    %67 = vector.shape_cast %66 : vector<1x32x32xbf16> to vector<32x32xbf16>
    %cst_55 = arith.constant dense<0.000000e+00> : vector<8x32xf32>
    %68 = tpu.matmul %65, %67, %cst_55 {dimension_numbers = #tpu.dot_dimension_numbers<[1], [0], [0], [1], [0, 0, 1, 1], [], []>} : vector<8x32xbf16>, vector<32x32xbf16>, vector<8x32xf32> -> vector<8x32xf32>
    %c2_56 = arith.constant 2 : index
    %c0_57 = arith.constant 0 : index
    %c0_58 = arith.constant 0 : index
    %69 = vector.load %arg4[%c2_56, %c0_57, %c0_58] : memref<3x1x32xf32, #tpu.memory_space<vmem>>, vector<1x1x32xf32>
    %70 = vector.shape_cast %69 : vector<1x1x32xf32> to vector<1x32xf32>
    %71 = vector.broadcast %70 : vector<1x32xf32> to vector<8x32xf32>
    %72 = arith.addf %68, %71 : vector<8x32xf32>
    %cst_59 = arith.constant 0.000000e+00 : f32
    %73 = vector.broadcast %cst_59 : f32 to vector<8x32xf32>
    %74 = arith.maximumf %72, %73 : vector<8x32xf32>
    %75 = arith.truncf %74 : vector<8x32xf32> to vector<8x32xbf16>
    %c2_60 = arith.constant 2 : index
    %c0_61 = arith.constant 0 : index
    %c0_62 = arith.constant 0 : index
    %76 = vector.load %arg5[%c2_60, %c0_61, %c0_62] : memref<3x32x8xbf16, #tpu.memory_space<vmem>>, vector<1x32x8xbf16>
    %77 = vector.shape_cast %76 : vector<1x32x8xbf16> to vector<32x8xbf16>
    %cst_63 = arith.constant dense<0.000000e+00> : vector<8x8xf32>
    %78 = tpu.matmul %75, %77, %cst_63 {dimension_numbers = #tpu.dot_dimension_numbers<[1], [0], [0], [1], [0, 0, 1, 1], [], []>} : vector<8x32xbf16>, vector<32x8xbf16>, vector<8x8xf32> -> vector<8x8xf32>
    %c2_64 = arith.constant 2 : index
    %c0_65 = arith.constant 0 : index
    %c0_66 = arith.constant 0 : index
    %79 = vector.load %arg6[%c2_64, %c0_65, %c0_66] : memref<3x1x8xf32, #tpu.memory_space<vmem>>, vector<1x1x8xf32>
    %80 = vector.shape_cast %79 : vector<1x1x8xf32> to vector<1x8xf32>
    %81 = vector.broadcast %80 : vector<1x8xf32> to vector<8x8xf32>
    %82 = arith.addf %78, %81 : vector<8x8xf32>
    %83 = tpu.concatenate %28, %55, %82 in 1 : vector<8x8xf32>, vector<8x8xf32>, vector<8x8xf32> -> vector<8x24xf32>
    %c0_67 = arith.constant 0 : index
    %c0_68 = arith.constant 0 : index
    %84 = vector.load %arg7[%c0_67, %c0_68] : memref<8x24xf32, #tpu.memory_space<vmem>>, vector<8x24xf32>
    tpu.vector_store %arg7[%c0_67, %c0_68], %83 {strides = array<i32>} : memref<8x24xf32, #tpu.memory_space<vmem>>, vector<8x24xf32>,
    return
  }
}

</mosaic_0001>

<bundles_post_ra>
// kernel: uncertainty_mlp_forward.1
= control target key start
LH: loop header
LB: loop body
LE: loop exit
PB: predicated region body
PF: predicated region fallthrough
CT: control target
= control target key end

     0   :  { %v804_v0 = vmov 0.0   ;;  %vm805_vm0 = vmmov 0   ;;  %vm44_vm1 = vcmask 130048   ;;  %vm113_vm2 = vcmask 261120   ;;  %s806_s17 = smov 8   ;;  %s807_s21 = smov 16   ;;  %s974_s1 = inlined_call_operand.vmem [shape: bf16[3,16,32], index: 1, kind: input, shape index: {}]   ;;  %s975_s0 = inlined_call_operand.vmem [shape: f32[8,16], index: 0, kind: input, shape index: {}]   ;;  %s976_s3 = inlined_call_operand.vmem [shape: bf16[3,32,32], index: 3, kind: input, shape index: {}]   ;;  %s977_s5 = inlined_call_operand.vmem [shape: bf16[3,32,8], index: 5, kind: input, shape index: {}]   ;;  %s978_s2 = inlined_call_operand.vmem [shape: f32[3,1,32], index: 2, kind: input, shape index: {}]   ;;  %s979_s4 = inlined_call_operand.vmem [shape: f32[3,1,32], index: 4, kind: input, shape index: {}]   ;;  %s980_s6 = inlined_call_operand.vmem [shape: f32[3,1,8], index: 6, kind: input, shape index: {}]   ;;  %s981_s7 = inlined_call_operand.vmem [shape: f32[8,24], index: 7, kind: output, shape index: {}]  }
   0x1   :  { %719 = vmatprep.subr.bf16.mxu0 %v804_v0  ;;  %v789_v1 = vld [vmem:[%s974_s1] sm:$0xff]   ;;  %721 = vmatprep.mubr.msk.bf16.mxu0 %vm805_vm0, %v804_v0  ;;  %v791_v5 = vld [vmem:[%s976_s3 + $0x8] sm:$0xff]   ;;  %v795_v24 = vld [vmem:[%s976_s3 + $0x10] sm:$0xff]   ;;  %vm627_vm3 = vcmask 64512   ;;  %vm630_vm4 = vcmask 195584  }
   0x2   :  { %v27_v2 = vld [vmem:[%s975_s0] sm:$0xff]  ;;  %725 = vmatprep.subr.bf16.mxu1 %v804_v0  ;;  %729 = vmatprep.mubr.msk.bf16.mxu1 %vm805_vm0, %v804_v0  ;;  %v792_v14 = vld [vmem:[%s974_s1 + $0x8] sm:$0xff]   ;;  %v796_v28 = vld [vmem:[%s976_s3 + $0x18] sm:$0xff]  }
   0x3   :  { %720 = vmatpush3.bf16.msra.mxu0 %v789_v1  ;;  %v860_v3 = vpack.c.bf16 %v27_v2, %v27_v2  ;;  %v790_v4 = vld [vmem:[%s976_s3] sm:$0xff]   ;;  %v794_v16 = vld [vmem:[%s977_s5 + $0x8] sm:$0xff]   ;;  %v797_v34 = vld [vmem:[%s974_s1 + $0x10] sm:$0xff]  }
   0x4   :  { %733 = vmatprep.subr.bf16.mxu0 %v804_v0  ;;  %726 = vmatpush3.bf16.msra.mxu1 %v790_v4  ;;  %v793_v6 = vld [vmem:[%s977_s5] sm:$0xff]   ;;  %v798_v36 = vld [vmem:[%s977_s5 + $0x10] sm:$0xff]   ;;  %v799_v37 = vld [vmem:[%s977_s5 + $0x18] sm:$0xff]  }
   0x5   :  { %727 = vmatprep.subr.bf16.mxu1 %v804_v0  ;;  %v636_v7 = vld [vmem:[%s978_s2] ss:$0 sm:$0xff]  ;;  %v650_v26 = vld [vmem:[%s978_s2 + $0x1] ss:$0 sm:$0xff]  ;;  %v674_v51 = vld [vmem:[%s978_s2 + $0x2] ss:$0 sm:$0xff] }
   0x6   :  { %722 = vmatmul.mubr.msk.bf16.vlgmr.msra.gmra.mrb[0].mxu0 %vm44_vm1, %v860_v3  ;;  %v639_v17 = vld [vmem:[%s979_s4] ss:$0 sm:$0xff]  ;;  %v658_v42 = vld [vmem:[%s979_s4 + $0x1] ss:$0 sm:$0xff]  ;;  %v801_v53 = vld [vmem:[%s976_s3 + $0x28] sm:$0xff]  }
   0x7   :  { %737 = vmatprep.mubr.msk.bf16.mxu0 %vm805_vm0, %v804_v0  ;;  %734 = vmatpush3.bf16.msra.mxu0 %v793_v6  ;;  %v800_v49 = vld [vmem:[%s976_s3 + $0x20] sm:$0xff]   ;;  %v803_v61 = vld [vmem:[%s977_s5 + $0x28] sm:$0xff]  }
   0x8   :  { %728 = vmatpush3.bf16.msra.mxu1 %v791_v5  ;;  %735 = vmatprep.subr.bf16.mxu0 %v804_v0  ;;  %v802_v60 = vld [vmem:[%s977_s5 + $0x20] sm:$0xff]  }
   0x9   :  { %741 = vmatprep.subr.bf16.mxu1 %v804_v0  ;;  %v667_v62 = vld [vmem:[%s980_s6 + $0x1] ss:$0 sm:$0xff] }
   0xb   :  { %736 = vmatpush3.bf16.msra.mxu0 %v794_v16 }
   0xc   :  { %747 = vmatprep.subr.bf16.mxu0 %v804_v0 }
  0xd9   :  { %v82_v8 = vpop.f32.mrb[0].mxu0 }
  0xda   :  { %v83_v9 = vadd.f32 %v636_v7, %v82_v8  ;;  %v723_v10 = vpop.f32.mrb[1].mxu0 }
  0xdb   :  { %v85_v11 = vpop.f32.mrb[2].mxu0 }
  0xdc   :  { %v88_v12 = vmax.f32 %v83_v9, 0.0  ;;  %v724_v13 = vpop.f32.mrb[3].mxu0 }
  0xde   :  { %v89_v15 = vpack.c.bf16 %v88_v12, %v88_v12  ;;  %v691_v12 = vld [vmem:[%s980_s6 + $0x2] ss:$0 sm:$0xff] }
  0xe0   :  { %730 = vmatmul.mubr.msk.bf16.vlgmr.msra.gmra.mrb[0].mxu1 %vm113_vm2, %v89_v15 }
  0xe1   :  { %742 = vmatpush3.bf16.msra.mxu1 %v792_v14  ;;  %743 = vmatprep.mubr.msk.bf16.mxu1 %vm805_vm0, %v804_v0 }
  0xe2   :  { %755 = vmatprep.subr.bf16.mxu1 %v804_v0 }
  0xe8   :  { %744 = vmatmul.mubr.msk.bf16.vlgmr.msra.gmra.mrb[4].mxu1 %vm44_vm1, %v860_v3 }
  0xe9   :  { %759 = vmatprep.mubr.msk.bf16.mxu1 %vm805_vm0, %v804_v0  ;;  %756 = vmatpush3.bf16.msra.mxu1 %v798_v36 }
  0xea   :  { %757 = vmatprep.subr.bf16.mxu1 %v804_v0 }
  0xed   :  { %758 = vmatpush3.bf16.msra.mxu1 %v799_v37 }
  0xee   :  { %769 = vmatprep.subr.bf16.mxu1 %v804_v0 }
 0x1b3   :  { %v151_v18 = vpop.f32.mrb[0].mxu1 }
 0x1b4   :  { %v152_v19 = vadd.f32 %v639_v17, %v151_v18  ;;  %v731_v20 = vpop.f32.mrb[1].mxu1  ;;  %v643_v18 = vld [vmem:[%s980_s6] ss:$0 sm:$0xff] }
 0x1b5   :  { %v154_v21 = vpop.f32.mrb[2].mxu1 }
 0x1b6   :  { %v157_v22 = vmax.f32 %v152_v19, 0.0  ;;  %v732_v23 = vpop.f32.mrb[3].mxu1 }
 0x1b8   :  { %v158_v25 = vpack.c.bf16 %v157_v22, %v157_v22 }
 0x1ba   :  { %738 = vmatmul.mubr.msk.bf16.vlgmr.msra.gmra.mrb[4].mxu0 %vm113_vm2, %v158_v25 }
 0x1bb   :  { %748 = vmatpush3.bf16.msra.mxu0 %v795_v24  ;;  %v276_v27 = vpop.f32.mrb[4].mxu1  ;;  %751 = vmatprep.mubr.msk.bf16.mxu0 %vm805_vm0, %v804_v0 }
 0x1bc   :  { %v277_v29 = vadd.f32 %v650_v26, %v276_v27  ;;  %v745_v30 = vpop.f32.mrb[5].mxu1  ;;  %749 = vmatprep.subr.bf16.mxu0 %v804_v0 }
 0x1bd   :  { %v279_v31 = vpop.f32.mrb[6].mxu1 }
 0x1be   :  { %v282_v32 = vmax.f32 %v277_v29, 0.0  ;;  %v746_v33 = vpop.f32.mrb[7].mxu1 }
 0x1bf   :  { %750 = vmatpush3.bf16.msra.mxu0 %v796_v28 }
 0x1c0   :  { %v283_v35 = vpack.c.bf16 %v282_v32, %v282_v32  ;;  %763 = vmatprep.subr.bf16.mxu0 %v804_v0 }
 0x1c2   :  { %752 = vmatmul.mubr.msk.bf16.vlgmr.msra.gmra.mrb[8].mxu0 %vm113_vm2, %v283_v35 }
 0x1c3   :  { %764 = vmatpush3.bf16.msra.mxu0 %v797_v34  ;;  %765 = vmatprep.mubr.msk.bf16.mxu0 %vm805_vm0, %v804_v0 }
 0x1c4   :  { %777 = vmatprep.subr.bf16.mxu0 %v804_v0 }
 0x1ca   :  { %766 = vmatmul.mubr.msk.bf16.vlgmr.msra.gmra.mrb[12].mxu0 %vm44_vm1, %v860_v3 }
 0x1cb   :  { %781 = vmatprep.mubr.msk.bf16.mxu0 %vm805_vm0, %v804_v0  ;;  %778 = vmatpush3.bf16.msra.mxu0 %v802_v60 }
 0x1cc   :  { %779 = vmatprep.subr.bf16.mxu0 %v804_v0 }
 0x1cf   :  { %780 = vmatpush3.bf16.msra.mxu0 %v803_v61 }
 0x28d   :  { %v219_v38 = vpop.f32.mrb[4].mxu0 }
 0x28e   :  { %v739_v39 = vpop.f32.mrb[5].mxu0  ;;  %v220_v20 = vadd.f32 %v643_v18, %v219_v38 }
 0x28f   :  { %v222_v40 = vpop.f32.mrb[6].mxu0 }
 0x290   :  { %v740_v41 = vpop.f32.mrb[7].mxu0 }
 0x295   :  { %v346_v43 = vpop.f32.mrb[8].mxu0 }
 0x296   :  { %v347_v44 = vadd.f32 %v658_v42, %v346_v43  ;;  %v753_v45 = vpop.f32.mrb[9].mxu0 }
 0x297   :  { %v349_v46 = vpop.f32.mrb[10].mxu0 }
 0x298   :  { %v352_v47 = vmax.f32 %v347_v44, 0.0  ;;  %v754_v48 = vpop.f32.mrb[11].mxu0 }
 0x29a   :  { %v353_v50 = vpack.c.bf16 %v352_v47, %v352_v47 }
 0x29c   :  { %760 = vmatmul.mubr.msk.bf16.vlgmr.msra.gmra.mrb[8].mxu1 %vm113_vm2, %v353_v50 }
 0x29d   :  { %770 = vmatpush3.bf16.msra.mxu1 %v800_v49  ;;  %v473_v52 = vpop.f32.mrb[12].mxu0  ;;  %773 = vmatprep.mubr.msk.bf16.mxu1 %vm805_vm0, %v804_v0 }
 0x29e   :  { %v474_v54 = vadd.f32 %v674_v51, %v473_v52  ;;  %v767_v55 = vpop.f32.mrb[13].mxu0  ;;  %771 = vmatprep.subr.bf16.mxu1 %v804_v0  ;;  %v682_v0 = vld [vmem:[%s979_s4 + $0x2] ss:$0 sm:$0xff] }
 0x29f   :  { %v476_v56 = vpop.f32.mrb[14].mxu0 }
 0x2a0   :  { %v479_v57 = vmax.f32 %v474_v54, 0.0  ;;  %v768_v58 = vpop.f32.mrb[15].mxu0 }
 0x2a1   :  { %772 = vmatpush3.bf16.msra.mxu1 %v801_v53 }
 0x2a2   :  { %v480_v59 = vpack.c.bf16 %v479_v57, %v479_v57 }
 0x2a4   :  { %774 = vmatmul.mubr.msk.bf16.vlgmr.msra.gmra.mrb[12].mxu1 %vm113_vm2, %v480_v59 }
 0x36f   :  { %v416_v63 = vpop.f32.mrb[8].mxu1 }
 0x370   :  { %v417_v1 = vadd.f32 %v667_v62, %v416_v63  ;;  %v761_v2 = vpop.f32.mrb[9].mxu1 }
 0x371   :  { %v419_v3 = vpop.f32.mrb[10].mxu1 }
 0x372   :  { %620 = vrot.lane.b32.xlu0 %v417_v1, %s806_s17  ;;  %v762_v4 = vpop.f32.mrb[11].mxu1 }
 0x377   :  { %v543_v5 = vpop.f32.mrb[12].mxu1 }
 0x378   :  { %v544_v6 = vadd.f32 %v682_v0, %v543_v5  ;;  %v775_v7 = vpop.f32.mrb[13].mxu1 }
 0x379   :  { %v546_v8 = vpop.f32.mrb[14].mxu1 }
 0x37a   :  { %v549_v9 = vmax.f32 %v544_v6, 0.0  ;;  %v776_v10 = vpop.f32.mrb[15].mxu1 }
 0x37c   :  { %v550_v11 = vpack.c.bf16 %v549_v9, %v549_v9 }
 0x37e   :  { %782 = vmatmul.mubr.msk.bf16.vlgmr.msra.gmra.mrb[16].mxu0 %vm113_vm2, %v550_v11 }
 0x3e4   :  { %v621_v19 = vpop.permute.xlu0 %620 }
 0x3e5   :  { %v628_v21 = vsel %vm627_vm3, %v220_v20, %v621_v19 }
 0x451   :  { %v613_v13 = vpop.f32.mrb[16].mxu0 }
 0x452   :  { %v614_v14 = vadd.f32 %v691_v12, %v613_v13  ;;  %v783_v15 = vpop.f32.mrb[17].mxu0 }
 0x453   :  { %v616_v16 = vpop.f32.mrb[18].mxu0 }
 0x454   :  { %624 = vrot.lane.b32.xlu0 %v614_v14, %s807_s21  ;;  %v784_v17 = vpop.f32.mrb[19].mxu0 }
 0x4c6   :  { %v625_v22 = vpop.permute.xlu0 %624 }
 0x4c7   :  { %v629_v23 = vsel %vm44_vm1, %v628_v21, %v625_v22 }
 0x4c8   :  { %631 = vst.msk [vmem:[%s981_s7] sm:$0xff] %vm630_vm4, %v629_v23 }

</bundles_post_ra>
